<compile_context>
chip_gen: v7x
topology: tpu7x:2x2x1
jax: 0.10.0
libtpu: 0.0.40
codegen_flags: <defaults>
</compile_context>

<pallas_src>
import jax
import jax.numpy as jnp
from jax import lax
from jax.experimental import pallas as pl
from jax.experimental.pallas import tpu as pltpu


# ---------------------------------------------------------------------------
# Single fused kernel: encoder -> (quant_conv ∘ VQ-distance) -> (post_quant_conv ∘ decoder)
# ---------------------------------------------------------------------------
def _vqmodel_fused_kernel(x_ref, wenc_ref, benc_ref, wdist_ref, e2_ref,
                          wout_ref, bout_ref, xrec_ref, idx_ref):
    """One pixel-tile of the full VQModel forward.

    Per-tile shapes (channels on sublanes, pixels on lanes):
      x    : (Cin,  tm)
      h    : (Cenc, tm)   encoder stand-in (1x1 conv + ReLU)
      dist : (K,    tm)   ||z - e_k||^2 up to a per-pixel constant (quant_conv folded in)
      xrec : (Cout, tm)   fused post_quant_conv + decoder (1x1), codebook folded in
    """
    x = x_ref[0]                                                         # (Cin, tm)

    # encoder (1x1 conv + ReLU)
    h = jnp.dot(wenc_ref[...], x, preferred_element_type=jnp.float32) + benc_ref[...]
    h = jnp.maximum(h, 0.0)                                              # (Cenc, tm)

    # VQ distance with quant_conv folded in:
    #   dist_k(j) = ||e_k||^2 - 2 e_k . z_j      (||z_j||^2 is per-pixel const -> dropped)
    #             = (-2 codebook Wqc) h_j + (||e||^2 - 2 codebook bqc)
    dist = jnp.dot(wdist_ref[...], h, preferred_element_type=jnp.float32) + e2_ref[...]

    # single-pass argmin: sortable int32 key, low bits carry the codebook index.
    k = dist.shape[0]
    nbits = max((k - 1).bit_length(), 1)
    bits = pltpu.bitcast(dist, jnp.int32)                                # (K, tm)
    key = jnp.where(bits >= 0, bits, bits ^ jnp.int32(2147483647))       # monotone in dist
    iota = lax.broadcasted_iota(jnp.int32, dist.shape, 0)                # (K, tm)
    packed = (key & jnp.int32(-(1 << nbits))) | iota                     # unique per k
    pmin = jnp.min(packed, axis=0, keepdims=True)                        # (1, tm)
    idx = pmin & jnp.int32((1 << nbits) - 1)                             # (1, tm)
    onehot = (packed == pmin).astype(jnp.float32)                        # (K, tm), exactly 1-hot

    # post_quant_conv + decoder + codebook lookup, all folded into one matmul at init
    y = jnp.dot(wout_ref[...], onehot, preferred_element_type=jnp.float32) + bout_ref[...]

    xrec_ref[0] = y.astype(xrec_ref.dtype)
    idx_ref[0] = idx


def _pick_tile(hw, n, target=2048):
    """Pixel-tile width: whole row if short, else a lane-dense multiple of 128.
    When n == 1, split the pixel axis so >=2 parallel programs exist (v7x megacore)."""
    if hw <= target:
        if n == 1 and hw >= 256 and hw % 256 == 0:
            return hw // 2              # two 128-aligned tiles -> both TensorCores busy
        return hw                       # block == full dim: always layout-legal
    return (target // 128) * 128        # multiple of 128; ragged last tile is masked


# ---------------------------------------------------------------------------
# VQModel (JAX / Pallas version)
# ---------------------------------------------------------------------------
class VQModelPallas:
    """Pallas version of VQModel's forward pass (single fused kernel)."""

    def __init__(self, key, *, in_ch=4, out_ch=4, encoder_dim=32,
                 decoder_dim=32, embed_dim=16, n_e=64, beta=0.25,
                 use_connector=True):
        self.beta = beta                      # TODO(synk): beta only enters the training-time
        self.use_connector = use_connector    # commitment loss, which forward() zeroes anyway.
        self.in_ch, self.out_ch = in_ch, out_ch
        ks = jax.random.split(key, 10)
        s = 0.1

        # encoder / decoder stand-ins (the original takes arbitrary injected nn.Modules).
        # TODO(synk): stand-ins are single 1x1-conv layers with matching hidden_dim semantics.
        # Weights stored pre-transposed as (Cout, Cin) for the channels-on-sublane layout.
        self.w_enc_T = s * jax.random.normal(ks[0], (encoder_dim, in_ch), jnp.float32)
        self.b_enc = (s * jax.random.normal(ks[1], (encoder_dim,), jnp.float32)).reshape(-1, 1)
        w_dec_T = s * jax.random.normal(ks[2], (out_ch, decoder_dim), jnp.float32)
        b_dec = (s * jax.random.normal(ks[3], (out_ch,), jnp.float32)).reshape(-1, 1)

        if use_connector:
            # quant_conv: Conv2d(encoder_dim, embed_dim, 1)
            self.w_qc_T = s * jax.random.normal(ks[4], (embed_dim, encoder_dim), jnp.float32)
            self.b_qc = (s * jax.random.normal(ks[5], (embed_dim,), jnp.float32)).reshape(-1, 1)
            # post_quant_conv: Conv2d(embed_dim, decoder_dim, 1)
            w_pqc_T = s * jax.random.normal(ks[6], (decoder_dim, embed_dim), jnp.float32)
            b_pqc = (s * jax.random.normal(ks[7], (decoder_dim,), jnp.float32)).reshape(-1, 1)
        else:
            assert encoder_dim == embed_dim and decoder_dim == embed_dim
            self.w_qc_T = jnp.eye(embed_dim, dtype=jnp.float32)
            self.b_qc = jnp.zeros((embed_dim, 1), jnp.float32)
            w_pqc_T = jnp.eye(decoder_dim, dtype=jnp.float32)
            b_pqc = jnp.zeros((decoder_dim, 1), jnp.float32)

        # quantize codebook (n_e, e_dim) + squared norms
        self.n_e = n_e
        self.codebook = jax.random.uniform(
            ks[8], (n_e, embed_dim), jnp.float32, minval=-1.0 / n_e, maxval=1.0 / n_e)
        self.e2 = jnp.sum(self.codebook * self.codebook, axis=1, keepdims=True)   # (n_e, 1)

        # --- exact algebraic folds (kernel-side operands) ---------------------------
        # quant_conv folded into the distance matrix:
        self.w_dist = -2.0 * (self.codebook @ self.w_qc_T)          # (n_e, encoder_dim)
        self.e2p = self.e2 - 2.0 * (self.codebook @ self.b_qc)      # (n_e, 1)
        # post_quant_conv + decoder folded, then codebook lookup folded in:
        self.w_post_T = w_dec_T @ w_pqc_T                           # (out_ch, embed_dim)
        self.b_post = w_dec_T @ b_pqc + b_dec                       # (out_ch, 1)
        self.w_out = self.w_post_T @ self.codebook.T                # (out_ch, n_e)

    # --- forward, mirroring the PyTorch VQModel (encode/decode are fused inside) ---
    def forward(self, x):
        """x: NCHW float32, like the PyTorch module. Returns (xrec, result_dict)."""
        n, c, h, w = x.shape
        assert c == self.in_ch
        hw = h * w
        xf = x.reshape(n, c, hw)           # free reshape: channels->sublanes, pixels->lanes
        tm = _pick_tile(hw, n)
        grid = (n, pl.cdiv(hw, tm))

        const = lambda i, j: (0, 0)        # weights fetched once, stay VMEM-resident
        xrec, idx = pl.pallas_call(
            _vqmodel_fused_kernel,
            out_shape=(
                jax.ShapeDtypeStruct((n, self.out_ch, hw), jnp.float32),
                jax.ShapeDtypeStruct((n, 1, hw), jnp.int32),
            ),
            grid_spec=pltpu.PrefetchScalarGridSpec(
                num_scalar_prefetch=0,
                grid=grid,
                in_specs=[
                    pl.BlockSpec((1, c, tm), lambda i, j: (i, 0, j)),
                    pl.BlockSpec(self.w_enc_T.shape, const),
                    pl.BlockSpec(self.b_enc.shape, const),
                    pl.BlockSpec(self.w_dist.shape, const),
                    pl.BlockSpec(self.e2p.shape, const),
                    pl.BlockSpec(self.w_out.shape, const),
                    pl.BlockSpec(self.b_post.shape, const),
                ],
                out_specs=(
                    pl.BlockSpec((1, self.out_ch, tm), lambda i, j: (i, 0, j)),
                    pl.BlockSpec((1, 1, tm), lambda i, j: (i, 0, j)),
                ),
            ),
            compiler_params=pltpu.CompilerParams(
                dimension_semantics=("parallel", "parallel")),
        )(xf, self.w_enc_T, self.b_enc, self.w_dist, self.e2p,
          self.w_out, self.b_post)

        xrec = xrec.reshape(n, self.out_ch, h, w)
        indices = idx.reshape(n, h, w)
        # The original forward zeroes the embedding loss (codebook_loss = emb_loss * 0),
        # so the per-pixel squared error is not computed at all (dead work in forward).
        # TODO(synk): the real quantize module also returns a nonzero emb_loss and uses a
        # straight-through estimator; both are training-only and do not affect this forward.
        result_dict = {
            "min_encoding_indices": indices,
            "quantizer_loss": 0,
            "commitment_loss": 0,
            "codebook_loss": jnp.zeros((), jnp.float32),
        }
        return xrec, result_dict


# ---------------------------------------------------------------------------
# Pure-JAX reference (UNFOLDED math, validates the algebraic folds too)
# ---------------------------------------------------------------------------
def _forward_ref(model, x):
    n, c, h, w = x.shape
    xf = x.reshape(n, c, h * w).astype(jnp.float32)
    hh = jnp.maximum(jnp.einsum("oc,ncm->nom", model.w_enc_T, xf) + model.b_enc[None], 0.0)
    z = jnp.einsum("oc,ncm->nom", model.w_qc_T, hh) + model.b_qc[None]
    z2 = jnp.sum(z * z, axis=1, keepdims=True)                        # (n,1,M)
    ze = jnp.einsum("kd,ndm->nkm", model.codebook, z)                 # (n,K,M)
    dist = z2 + model.e2[None] - 2.0 * ze                             # full squared distance
    idx = jnp.argmin(dist, axis=1)                                    # (n, M)
    zq = jnp.transpose(jnp.take(model.codebook, idx, axis=0), (0, 2, 1))   # (n, D, M)
    y = jnp.einsum("od,ndm->nom", model.w_post_T, zq) + model.b_post[None]
    return y.reshape(n, -1, h, w), idx.reshape(n, h, w)


if __name__ == "__main__":
    key = jax.random.PRNGKey(0)
    k_param, k_x = jax.random.split(key)

    model = VQModelPallas(k_param, in_ch=4, out_ch=4, encoder_dim=32,
                          decoder_dim=32, embed_dim=16, n_e=64)

    x = jax.random.normal(k_x, (2, 4, 16, 16), jnp.float32)   # NCHW

    xrec, result_dict = model.forward(x)
    xrec = jax.block_until_ready(xrec)
    idx = jax.block_until_ready(result_dict["min_encoding_indices"])
    cb_loss = jax.block_until_ready(result_dict["codebook_loss"])

    assert xrec.shape == (2, 4, 16, 16) and xrec.dtype == jnp.float32
    assert idx.shape == (2, 16, 16) and idx.dtype == jnp.int32
    assert int(idx.min()) >= 0 and int(idx.max()) < 64
    assert float(cb_loss) == 0.0

    # validate against the pure-JAX (unfolded) reference
    xrec_ref, idx_ref = _forward_ref(model, x)
    # near-tied distances may pick a different (equally-near) code than torch/jnp argmin;
    # tolerate <1% index mismatch, xrec must still agree closely.
    assert float(jnp.mean((idx == idx_ref).astype(jnp.float32))) > 0.99
    assert jnp.allclose(xrec, xrec_ref, atol=1e-2), float(jnp.max(jnp.abs(xrec - xrec_ref)))

    print("KERNEL_OK")
</pallas_src>

<mosaic_0001>
module attributes {stable_mosaic.version = 11 : i64} {
  func.func @_vqmodel_fused_kernel(%arg0: i32, %arg1: i32, %arg2: memref<1x4x256xf32, #tpu.memory_space<vmem>>, %arg3: memref<32x4xf32, #tpu.memory_space<vmem>>, %arg4: memref<32x1xf32, #tpu.memory_space<vmem>>, %arg5: memref<64x32xf32, #tpu.memory_space<vmem>>, %arg6: memref<64x1xf32, #tpu.memory_space<vmem>>, %arg7: memref<4x64xf32, #tpu.memory_space<vmem>>, %arg8: memref<4x1xf32, #tpu.memory_space<vmem>>, %arg9: memref<1x4x256xf32, #tpu.memory_space<vmem>>, %arg10: memref<1x1x256xi32, #tpu.memory_space<vmem>>) attributes {dimension_semantics = [#tpu.dimension_semantics<parallel>, #tpu.dimension_semantics<parallel>], iteration_bounds = array<i64: 2, 1>, scalar_prefetch = 0 : i64, scratch_operands = 0 : i64, tpu.core_type = #tpu.core_type<tc>, window_params = [{transform_indices = @transform_0, window_bounds = array<i64: 1, 4, 256>}, {pipeline_mode = #tpu.pipeline_mode<synchronous>, transform_indices = @transform_1, window_bounds = array<i64: 32, 4>}, {pipeline_mode = #tpu.pipeline_mode<synchronous>, transform_indices = @transform_2, window_bounds = array<i64: 32, 1>}, {pipeline_mode = #tpu.pipeline_mode<synchronous>, transform_indices = @transform_3, window_bounds = array<i64: 64, 32>}, {pipeline_mode = #tpu.pipeline_mode<synchronous>, transform_indices = @transform_4, window_bounds = array<i64: 64, 1>}, {pipeline_mode = #tpu.pipeline_mode<synchronous>, transform_indices = @transform_5, window_bounds = array<i64: 4, 64>}, {pipeline_mode = #tpu.pipeline_mode<synchronous>, transform_indices = @transform_6, window_bounds = array<i64: 4, 1>}, {transform_indices = @transform_7, window_bounds = array<i64: 1, 4, 256>}, {transform_indices = @transform_8, window_bounds = array<i64: 1, 1, 256>}]} {
    %c0 = arith.constant 0 : index
    %c0_0 = arith.constant 0 : index
    %c0_1 = arith.constant 0 : index
    %0 = vector.load %arg2[%c0, %c0_0, %c0_1] : memref<1x4x256xf32, #tpu.memory_space<vmem>>, vector<1x4x256xf32>
    %1 = vector.shape_cast %0 : vector<1x4x256xf32> to vector<4x256xf32>
    %c0_2 = arith.constant 0 : index
    %c0_3 = arith.constant 0 : index
    %2 = vector.load %arg3[%c0_2, %c0_3] : memref<32x4xf32, #tpu.memory_space<vmem>>, vector<32x4xf32>
    %cst = arith.constant dense<0.000000e+00> : vector<32x256xf32>
    %3 = tpu.matmul %2, %1, %cst {dimension_numbers = #tpu.dot_dimension_numbers<[1], [0], [0], [1], [0, 0, 1, 1], [], []>} : vector<32x4xf32>, vector<4x256xf32>, vector<32x256xf32> -> vector<32x256xf32>
    %c0_4 = arith.constant 0 : index
    %c0_5 = arith.constant 0 : index
    %4 = vector.load %arg4[%c0_4, %c0_5] : memref<32x1xf32, #tpu.memory_space<vmem>>, vector<32x1xf32>
    %5 = vector.broadcast %4 : vector<32x1xf32> to vector<32x256xf32>
    %6 = arith.addf %3, %5 : vector<32x256xf32>
    %cst_6 = arith.constant 0.000000e+00 : f32
    %7 = vector.broadcast %cst_6 : f32 to vector<32x256xf32>
    %8 = arith.maximumf %6, %7 : vector<32x256xf32>
    %c0_7 = arith.constant 0 : index
    %c0_8 = arith.constant 0 : index
    %9 = vector.load %arg5[%c0_7, %c0_8] : memref<64x32xf32, #tpu.memory_space<vmem>>, vector<64x32xf32>
    %cst_9 = arith.constant dense<0.000000e+00> : vector<64x256xf32>
    %10 = tpu.matmul %9, %8, %cst_9 {dimension_numbers = #tpu.dot_dimension_numbers<[1], [0], [0], [1], [0, 0, 1, 1], [], []>} : vector<64x32xf32>, vector<32x256xf32>, vector<64x256xf32> -> vector<64x256xf32>
    %c0_10 = arith.constant 0 : index
    %c0_11 = arith.constant 0 : index
    %11 = vector.load %arg6[%c0_10, %c0_11] : memref<64x1xf32, #tpu.memory_space<vmem>>, vector<64x1xf32>
    %12 = vector.broadcast %11 : vector<64x1xf32> to vector<64x256xf32>
    %13 = arith.addf %10, %12 : vector<64x256xf32>
    %14 = tpu.bitcast %13 : vector<64x256xf32> -> vector<64x256xi32>
    %c0_i32 = arith.constant 0 : i32
    %15 = vector.broadcast %c0_i32 : i32 to vector<64x256xi32>
    %16 = arith.cmpi sge, %14, %15 : vector<64x256xi32>
    %c2147483647_i32 = arith.constant 2147483647 : i32
    %17 = vector.broadcast %c2147483647_i32 : i32 to vector<64x256xi32>
    %18 = arith.xori %14, %17 : vector<64x256xi32>
    %19 = arith.select %16, %14, %18 : vector<64x256xi1>, vector<64x256xi32>
    %20 = tpu.iota {dimensions = array<i32: 0>} : vector<64x256xi32>
    %c-64_i32 = arith.constant -64 : i32
    %21 = vector.broadcast %c-64_i32 : i32 to vector<64x256xi32>
    %22 = arith.andi %19, %21 : vector<64x256xi32>
    %23 = arith.ori %22, %20 : vector<64x256xi32>
    %cst_12 = arith.constant dense<2147483647> : vector<256xi32>
    %24 = vector.multi_reduction <minsi>, %23, %cst_12 [0] : vector<64x256xi32> to vector<256xi32>
    %25 = vector.shape_cast %24 : vector<256xi32> to vector<1x256xi32>
    %c63_i32 = arith.constant 63 : i32
    %26 = vector.broadcast %c63_i32 : i32 to vector<1x256xi32>
    %27 = arith.andi %25, %26 : vector<1x256xi32>
    %28 = vector.broadcast %25 : vector<1x256xi32> to vector<64x256xi32>
    %29 = arith.cmpi eq, %23, %28 : vector<64x256xi32>
    %30 = arith.extui %29 : vector<64x256xi1> to vector<64x256xi32>
    %31 = arith.sitofp %30 : vector<64x256xi32> to vector<64x256xf32>
    %c0_13 = arith.constant 0 : index
    %c0_14 = arith.constant 0 : index
    %32 = vector.load %arg7[%c0_13, %c0_14] : memref<4x64xf32, #tpu.memory_space<vmem>>, vector<4x64xf32>
    %cst_15 = arith.constant dense<0.000000e+00> : vector<4x256xf32>
    %33 = tpu.matmul %32, %31, %cst_15 {dimension_numbers = #tpu.dot_dimension_numbers<[1], [0], [0], [1], [0, 0, 1, 1], [], []>} : vector<4x64xf32>, vector<64x256xf32>, vector<4x256xf32> -> vector<4x256xf32>
    %c0_16 = arith.constant 0 : index
    %c0_17 = arith.constant 0 : index
    %34 = vector.load %arg8[%c0_16, %c0_17] : memref<4x1xf32, #tpu.memory_space<vmem>>, vector<4x1xf32>
    %35 = vector.broadcast %34 : vector<4x1xf32> to vector<4x256xf32>
    %36 = arith.addf %33, %35 : vector<4x256xf32>
    %c0_18 = arith.constant 0 : index
    %c0_19 = arith.constant 0 : index
    %c0_20 = arith.constant 0 : index
    %37 = vector.load %arg9[%c0_18, %c0_19, %c0_20] : memref<1x4x256xf32, #tpu.memory_space<vmem>>, vector<1x4x256xf32>
    %38 = vector.shape_cast %37 : vector<1x4x256xf32> to vector<4x256xf32>
    %39 = vector.shape_cast %36 : vector<4x256xf32> to vector<1x4x256xf32>
    tpu.vector_store %arg9[%c0_18, %c0_19, %c0_20], %39 {strides = array<i32>} : memref<1x4x256xf32, #tpu.memory_space<vmem>>, vector<1x4x256xf32>,
    %c0_21 = arith.constant 0 : index
    %c0_22 = arith.constant 0 : index
    %c0_23 = arith.constant 0 : index
    %40 = vector.load %arg10[%c0_21, %c0_22, %c0_23] : memref<1x1x256xi32, #tpu.memory_space<vmem>>, vector<1x1x256xi32>
    %41 = vector.shape_cast %40 : vector<1x1x256xi32> to vector<1x256xi32>
    %42 = vector.shape_cast %27 : vector<1x256xi32> to vector<1x1x256xi32>
    tpu.vector_store %arg10[%c0_21, %c0_22, %c0_23], %42 {strides = array<i32>} : memref<1x1x256xi32, #tpu.memory_space<vmem>>, vector<1x1x256xi32>,
    return
  }
  func.func @transform_0(%arg0: i32, %arg1: i32) -> (i32, i32, i32) {
    %c0_i32 = arith.constant 0 : i32
    %c0_i32_0 = arith.constant 0 : i32
    return %arg0, %c0_i32, %arg1 : i32, i32, i32
  }
  func.func @transform_1(%arg0: i32, %arg1: i32) -> (i32, i32) {
    %c0_i32 = arith.constant 0 : i32
    %c0_i32_0 = arith.constant 0 : i32
    %c0_i32_1 = arith.constant 0 : i32
    return %c0_i32, %c0_i32_0 : i32, i32
  }
  func.func @transform_2(%arg0: i32, %arg1: i32) -> (i32, i32) {
    %c0_i32 = arith.constant 0 : i32
    %c0_i32_0 = arith.constant 0 : i32
    %c0_i32_1 = arith.constant 0 : i32
    return %c0_i32, %c0_i32_0 : i32, i32
  }
  func.func @transform_3(%arg0: i32, %arg1: i32) -> (i32, i32) {
    %c0_i32 = arith.constant 0 : i32
    %c0_i32_0 = arith.constant 0 : i32
    %c0_i32_1 = arith.constant 0 : i32
    return %c0_i32, %c0_i32_0 : i32, i32
  }
  func.func @transform_4(%arg0: i32, %arg1: i32) -> (i32, i32) {
    %c0_i32 = arith.constant 0 : i32
    %c0_i32_0 = arith.constant 0 : i32
    %c0_i32_1 = arith.constant 0 : i32
    return %c0_i32, %c0_i32_0 : i32, i32
  }
  func.func @transform_5(%arg0: i32, %arg1: i32) -> (i32, i32) {
    %c0_i32 = arith.constant 0 : i32
    %c0_i32_0 = arith.constant 0 : i32
    %c0_i32_1 = arith.constant 0 : i32
    return %c0_i32, %c0_i32_0 : i32, i32
  }
  func.func @transform_6(%arg0: i32, %arg1: i32) -> (i32, i32) {
    %c0_i32 = arith.constant 0 : i32
    %c0_i32_0 = arith.constant 0 : i32
    %c0_i32_1 = arith.constant 0 : i32
    return %c0_i32, %c0_i32_0 : i32, i32
  }
  func.func @transform_7(%arg0: i32, %arg1: i32) -> (i32, i32, i32) {
    %c0_i32 = arith.constant 0 : i32
    %c0_i32_0 = arith.constant 0 : i32
    return %arg0, %c0_i32, %arg1 : i32, i32, i32
  }
  func.func @transform_8(%arg0: i32, %arg1: i32) -> (i32, i32, i32) {
    %c0_i32 = arith.constant 0 : i32
    %c0_i32_0 = arith.constant 0 : i32
    return %arg0, %c0_i32, %arg1 : i32, i32, i32
  }
}

</mosaic_0001>

<bundles_post_ra>
// kernel: tpu_custom_call.1
= control target key start
LH: loop header
LB: loop body
LE: loop exit
PB: predicated region body
PF: predicated region fallthrough
CT: control target
= control target key end

     0   :  { %s1822_s0 = inlined_call_operand.vmem [shape: f32[2,4,256], index: 0, kind: input, shape index: {}]   ;;  %s1823_s1 = inlined_call_operand.vmem [shape: f32[32,4], index: 1, kind: input, shape index: {}]   ;;  %s1824_s2 = inlined_call_operand.vmem [shape: f32[32,1], index: 2, kind: input, shape index: {}]   ;;  %s1825_s3 = inlined_call_operand.vmem [shape: f32[64,32], index: 3, kind: input, shape index: {}]   ;;  %s1826_s4 = inlined_call_operand.vmem [shape: f32[64,1], index: 4, kind: input, shape index: {}]   ;;  %s1827_s5 = inlined_call_operand.vmem [shape: f32[4,64], index: 5, kind: input, shape index: {}]   ;;  %s1828_s6 = inlined_call_operand.vmem [shape: f32[4,1], index: 6, kind: input, shape index: {}]   ;;  %s1829_s7 = inlined_call_operand.hbm [shape: f32[2,4,256], index: 7, kind: output, shape index: {0}]   ;;  %s1830_s8 = inlined_call_operand.hbm [shape: s32[2,1,256], index: 8, kind: output, shape index: {1}]  }
   0x1   :  { %1831 = sst [smem:[#allocation8_spill]] %s1822_s0 }
   0x2   :  { %14 = vsyncpa [#allocation3], 0 }
   0x3   :  { %16 = vsyncpa [#allocation3 + $0x1], 0 }
   0x4   :  { %17 = vsyncpa [#allocation5], 0 }
   0x5   :  { %19 = vsyncpa [#allocation5 + $0x1], 0  ;;  %s1467_s27 = smov 0   ;;  %s1469_s28 = smov 0  }
   0x6   :  { %s1471_s29 = smov 0   ;;  %s1473_s30 = smov 0  }
   0x7   :  { %s1475_s9 = smov 0   ;;  %s1477_s10 = smov 0  }
   0x8 LB: > { %s1146_s11 = sadd.s32 4294967295, %s1414_s10   ;;  %s1147_s12 = sadd.s32 4294967294, %s1414_s10   ;;  %s1414_s10 = sphi %s1477_s10, %s25_s10   ;;  %s1410_s9 = sphi %s1475_s9, %s1841_s9   ;;  %s1406_s30 = sphi %s1473_s30, %s1840_s30   ;;  %s1402_s29 = sphi %s1471_s29, %s1839_s29   ;;  %s1398_s28 = sphi %s1469_s28, %s1838_s28   ;;  %s1394_s27 = sphi %s1467_s27, %s1837_s27  }
   0x9   : > { %s37_s13 = sadd.s32 1, %s1410_s9  ;;  %s200_s14 = sadd.s32 1, %s1402_s29 }
   0xa   : > { %p39_p0 = scmp.ge.s32.totalorder %s37_s13, 2  ;;  %p210_p1 = scmp.ne.s32.totalorder %s1402_s29, %s1398_s28 }
   0xb   : > { %p211_p2 = scmp.eq.s32.totalorder %s1146_s11, 1  ;;  %p216_p3 = scmp.ne.s32.totalorder %s1398_s28, %s1394_s27 }
   0xc   : > { %s1843_s13 = smov (%p39_p0, %s37_s13), 0  ;;  %p217_p5 = scmp.eq.s32.totalorder %s1147_s12, 1 }
   0xd   : > { %p1507_p4 = por %p211_p2, %p210_p1  ;;  %s195_s16 = ssub.s32 %s1410_s9, %s1843_s13 }
   0xe   : > { %p1150_p6 = scmp.ge.s32.totalorder %s1414_s10, 1  ;;  %p198_p7 = scmp.eq.s32.totalorder %s195_s16, 0 }
   0xf   : > { %p1514_p8 = por %p217_p5, %p216_p3  ;;  %p294_p9 = scmp.lt.s32.totalorder %s1414_s10, 3 }
  0x10   : > { %s1520_s18 = scalar_select %p198_p7, %s1402_s29, %s200_s14  }
  0x11   : > { %p295_p10 = pnand %p1150_p6, %p294_p9 }
  0x12   : > { %p338_p11 = scmp.lt.s32.totalorder (!%p295_p10), %s1406_s30, 1  ;;  %v1416_v0 = vmov (!%p295_p10), 0.0   ;;  %v354_v1 = vld [vmem:[%s1824_s2] sm:$0xff] (!%p295_p10)  ;;  %v1417_v2 = vmov (!%p295_p10), 0   ;;  %v356_v3 = vld [vmem:[%s1824_s2 + $0x10] sm:$0xff] (!%p295_p10)  ;;  %v355_v4 = vld [vmem:[%s1824_s2 + $0x8] sm:$0xff] (!%p295_p10) }
  0x13   : > { %298 = sbr.rel (%p295_p10) target bundleno = 788 (0x314), region = 48  ;;  %462 = vmatprep.mubr.f32.mxu0 (!%p295_p10), %v1416_v0  ;;  %640 = vmatprep.mubr.f32.mxu1 (!%p295_p10), %v1416_v0  ;;  %v357_v5 = vld [vmem:[%s1824_s2 + $0x18] sm:$0xff] (!%p295_p10)  ;;  %s1834_s0 = sld [smem:[#allocation8_spill]] (!%p295_p10)  ;;  %vm393_vm0 = vcmask (!%p295_p10), 1043456   ;;  %v350_v8 = vld [vmem:[%s1823_s1] sm:$0xff] (!%p295_p10)  ;;  %vm380_vm1 = vcmask (!%p295_p10), 31744  }
  0x14   : > { %1301 = vset.pattern.permute.xlu0 (!%p295_p10), %v1417_v2  ;;  %1302 = vset.pattern.permute.xlu1 (!%p295_p10), %v1417_v2  ;;  %v503_v9 = vld [vmem:[%s1826_s4] sm:$0xff] (!%p295_p10)  ;;  %v504_v10 = vld [vmem:[%s1826_s4 + $0x8] sm:$0xff] (!%p295_p10)  ;;  %v505_v12 = vld [vmem:[%s1826_s4 + $0x10] sm:$0xff] (!%p295_p10)  ;;  %vm551_vm2 = vcmask (!%p295_p10), 261120  }
  0x15   : > { %360 = vperm.xlu0 (!%p295_p10), %1301, %v354_v1   ;;  %370 = vperm.xlu1 (!%p295_p10), %1302, %v356_v3   ;;  %v351_v11 = vld [vmem:[%s1823_s1 + $0x8] sm:$0xff] (!%p295_p10)  ;;  %v506_v13 = vld [vmem:[%s1826_s4 + $0x18] sm:$0xff] (!%p295_p10)  ;;  %v352_v14 = vld [vmem:[%s1823_s1 + $0x10] sm:$0xff] (!%p295_p10) }
  0x16   : > { %v507_v15 = vld [vmem:[%s1826_s4 + $0x20] sm:$0xff] (!%p295_p10)  ;;  %v508_v16 = vld [vmem:[%s1826_s4 + $0x28] sm:$0xff] (!%p295_p10)  ;;  %v353_v17 = vld [vmem:[%s1823_s1 + $0x18] sm:$0xff] (!%p295_p10) }
  0x17   : > { %v509_v18 = vld [vmem:[%s1826_s4 + $0x30] sm:$0xff] (!%p295_p10)  ;;  %v510_v19 = vld [vmem:[%s1826_s4 + $0x38] sm:$0xff] (!%p295_p10)  ;;  %v891_v20 = vld [vmem:[%s1828_s6] sm:$0xf] (!%p295_p10) }
  0x18   : > { %v495_v53 = vld [vmem:[%s1825_s3] sm:$0xff] (!%p295_p10)  ;;  %v496_v54 = vld [vmem:[%s1825_s3 + $0x8] sm:$0xff] (!%p295_p10)  ;;  %v497_v55 = vld [vmem:[%s1825_s3 + $0x10] sm:$0xff] (!%p295_p10) }
  0x19   : > { %365 = vperm.xlu0 (!%p295_p10), %1301, %v355_v4   ;;  %375 = vperm.xlu1 (!%p295_p10), %1302, %v357_v5   ;;  %v498_v56 = vld [vmem:[%s1825_s3 + $0x18] sm:$0xff] (!%p295_p10)  ;;  %v499_v57 = vld [vmem:[%s1825_s3 + $0x20] sm:$0xff] (!%p295_p10)  ;;  %v500_v58 = vld [vmem:[%s1825_s3 + $0x28] sm:$0xff] (!%p295_p10)  ;;  %v753_v4 = vlaneseq (!%p295_p10) }
  0x1a   : > { %s339_s21 = scalar_select %p338_p11, %s1406_s30, 1  ;;  %v501_v59 = vld [vmem:[%s1825_s3 + $0x30] sm:$0xff]  ;;  %v502_v60 = vld [vmem:[%s1825_s3 + $0x38] sm:$0xff] }
  0x1c   : > { %s1210_s24 = sshll.u32 %s339_s21, 3 }
  0x1d   : > { %s345_s19 = scalar_lea.vmem %s1834_s0, %s1210_s24  ;;  %513 = vperm.xlu0 %1301, %v503_v9   ;;  %518 = vperm.xlu1 %1302, %v504_v10   ;;  %s1722_s24 = sand.u32 1, %s1398_s28  }
  0x1e   : > { %v349_v6 = vld [vmem:[%s345_s19] sm:$0xff]  ;;  %s1152_s11 = sshll.u32 %s1722_s24, 1  ;;  %s1212_s19 = sshll.u32 %s1406_s30, 5 }
  0x1f   : > { %v379_v7 = vcombine.high %v349_v6, %v349_v6  ;;  %s336_s12 = scalar_lea.vmem [#allocation4], %s1152_s11  ;;  %s1749_s23 = scalar_lea.hbm %s1830_s8, %s1212_s19 }
  0x20   : > { %s1035_s20 = sshll.u32 %s336_s12, 4  ;;  %s1003_s25 = scalar_lea.sflag [#allocation5], %s1722_s24  ;;  %s1036_s20 = int_to_ptr.vmem [resolvable:$true] %s1035_s20 }
  0x21   : > { %1155 = vmatprep.subr.msk.mxu0 %vm393_vm0, %v379_v7  ;;  %523 = vperm.xlu0 %1301, %v505_v12   ;;  %s1304_s26 = scalar_lea.vmem %s1036_s20, 32  ;;  %s1420_s11 = smov [#allocation4]  }
  0x22   : > { %1156 = vmatpush1.msk.msra.mxu0 %vm393_vm0, %v349_v6  ;;  %528 = vperm.xlu1 %1302, %v506_v13   ;;  %p1305_p12 = scmp.ne.s32.totalorder %s1036_s20, %s1304_s26  ;;  %s1308_s0 = sshll.u32 %s1420_s11, 4  ;;  %s1309_s0 = int_to_ptr.vmem [resolvable:$false] %s1308_s0 }
  0x23   : > { %1157 = vmatmul.mubr.msk.f32.vlgmr.msra.gmra.mrb[0].mxu0 %vm380_vm1, %v350_v8  ;;  %s1310_s14 = scalar_lea.vmem %s1309_s0, 64  ;;  %p1311_p1 = scmp.lt.s32.totalorder %s1036_s20, %s1309_s0 }
  0x24   : > { %468 = vmatprep.mubr.f32.mxu0 %v1416_v0  ;;  %p1306_p13 = pnand %p1305_p12, %p1507_p4  ;;  %p1312_p2 = scmp.lt.s32.totalorder %s1310_s14, %s1304_s26 }
  0x25   : > { %533 = vperm.xlu0 %1301, %v507_v15  }
  0x26   : > { %538 = vperm.xlu1 %1302, %v508_v16   ;;  %p1307_p0 = pneg %p1306_p13  ;;  %p1313_p3 = por %p1312_p2, %p1311_p1 }
  0x27   : > { %1158 = vmatmul.mubr.msk.f32.gmra.mrb[2].mxu0 %vm380_vm1, %v351_v11  ;;  %v1628_v11 = vshrl.u32 %v753_v4, 7 }
  0x28   : > { %474 = vmatprep.mubr.f32.mxu0 %v1416_v0  ;;  %p1314_p5 = pnand %p1313_p3, %p1307_p0 }
  0x29   : > { %543 = vperm.xlu0 %1301, %v509_v18   ;;  %v755_v16 = vadd.s32 8, %v1628_v11 }
  0x2a   : > { %548 = vperm.xlu1 %1302, %v510_v19  }
  0x2b   : > { %1159 = vmatmul.mubr.msk.f32.gmra.mrb[4].mxu0 %vm380_vm1, %v352_v14 }
  0x2c   : > { %480 = vmatprep.mubr.f32.mxu0 %v1416_v0 }
  0x2d   : > { %894 = vperm.xlu0 %1301, %v891_v20  }
  0x2f   : > { %1160 = vmatmul.mubr.msk.f32.gmra.mrb[6].mxu0 %vm380_vm1, %v353_v17 }
  0x30   : > { %965 = vmatprep.mubr.f32.mxu0 %v1416_v0 }
  0x94   : > { %v361_v21 = vpop.permute.xlu0 %360  ;;  %v371_v30 = vpop.permute.xlu1 %370 }
  0x98   : > { %v366_v25 = vpop.permute.xlu0 %365  ;;  %v376_v41 = vpop.permute.xlu1 %375 }
  0x9c   : > { %v514_v61 = vpop.permute.xlu0 %513  ;;  %v519_v5 = vpop.permute.xlu1 %518 }
  0xa0   : > { %v524_v13 = vpop.permute.xlu0 %523 }
  0xf6   : > { %v464_v22 = vpop.f32.mrb[0].mxu0 }
  0xf7   : > { %v466_v23 = vpop.f32.mrb[1].mxu0  ;;  %v465_v24 = vadd.f32 %v464_v22, %v361_v21 }
  0xf8   : > { %v467_v26 = vadd.f32 %v466_v23, %v361_v21 }
  0xf9   : > { %v487_v32 = vmax.f32 %v465_v24, 0.0 }
  0xfa   : > { %v470_v27 = vpop.f32.mrb[2].mxu0  ;;  %v488_v34 = vmax.f32 %v467_v26, 0.0  ;;  %v529_v26 = vpop.permute.xlu1 %528 }
  0xfb   : > { %v471_v28 = vadd.f32 %v470_v27, %v366_v25  ;;  %v472_v29 = vpop.f32.mrb[3].mxu0 }
  0xfc   : > { %v473_v31 = vadd.f32 %v472_v29, %v366_v25  ;;  %v756_v25 = vadd.s32 16, %v1628_v11  ;;  %v757_v29 = vadd.s32 24, %v1628_v11 }
  0xfd   : > { %v489_v33 = vmax.f32 %v471_v28, 0.0 }
  0xfe   : > { %v490_v35 = vmax.f32 %v473_v31, 0.0  ;;  %v476_v36 = vpop.f32.mrb[4].mxu0 }
  0xff   : > { %v478_v37 = vpop.f32.mrb[5].mxu0  ;;  %v1215_v38 = vpack.c.bf16 %v489_v33, %v487_v32  ;;  %v477_v40 = vadd.f32 %v476_v36, %v371_v30 }
 0x100   : > { %v1213_v39 = vpack.c.bf16 %v490_v35, %v488_v34  ;;  %v479_v42 = vadd.f32 %v478_v37, %v371_v30  ;;  %v1634_v30 = vadd.s32 32, %v1628_v11 }
 0x101   : > { %v491_v47 = vmax.f32 %v477_v40, 0.0 }
 0x102   : > { %v482_v43 = vpop.f32.mrb[6].mxu0  ;;  %1214 = vmatprep.subr.bf16.mxu1 %v1213_v39  ;;  %v492_v49 = vmax.f32 %v479_v42, 0.0 }
 0x103   : > { %v483_v44 = vadd.f32 %v482_v43, %v376_v41  ;;  %v484_v45 = vpop.f32.mrb[7].mxu0  ;;  %1216 = vmatpush1.bf16.msra.mxu1 %v1215_v38  ;;  %v534_v43 = vpop.permute.xlu0 %533 }
 0x104   : > { %v485_v46 = vadd.f32 %v484_v45, %v376_v41 }
 0x105   : > { %v493_v48 = vmax.f32 %v483_v44, 0.0 }
 0x106   : > { %v494_v50 = vmax.f32 %v485_v46, 0.0 }
 0x107   : > { %v1219_v51 = vpack.c.bf16 %v493_v48, %v491_v47 }
 0x108   : > { %v1217_v52 = vpack.c.bf16 %v494_v50, %v492_v49 }
 0x10a   : > { %1218 = vmatprep.subr.bf16.mxu1 %v1217_v52 }
 0x10b   : > { %1220 = vmatpush1.bf16.msra.mxu1 %v1219_v51 }
 0x10e   : > { %1161 = vmatmul.mubr.msk.f32.vlgmr.msra.gmra.mrb[0].mxu1 %vm551_vm2, %v495_v53 }
 0x10f   : > { %646 = vmatprep.mubr.f32.mxu1 %v1416_v0 }
 0x112   : > { %1162 = vmatmul.mubr.msk.f32.gmra.mrb[2].mxu1 %vm551_vm2, %v496_v54 }
 0x113   : > { %652 = vmatprep.mubr.f32.mxu1 %v1416_v0 }
 0x116   : > { %1163 = vmatmul.mubr.msk.f32.gmra.mrb[4].mxu1 %vm551_vm2, %v497_v55 }
 0x117   : > { %658 = vmatprep.mubr.f32.mxu1 %v1416_v0 }
 0x11a   : > { %1164 = vmatmul.mubr.msk.f32.gmra.mrb[6].mxu1 %vm551_vm2, %v498_v56 }
 0x11b   : > { %664 = vmatprep.mubr.f32.mxu1 %v1416_v0 }
 0x11e   : > { %1165 = vmatmul.mubr.msk.f32.gmra.mrb[8].mxu1 %vm551_vm2, %v499_v57 }
 0x11f   : > { %670 = vmatprep.mubr.f32.mxu1 %v1416_v0 }
 0x122   : > { %1166 = vmatmul.mubr.msk.f32.gmra.mrb[10].mxu1 %vm551_vm2, %v500_v58  ;;  %v539_v58 = vpop.permute.xlu1 %538 }
 0x123   : > { %676 = vmatprep.mubr.f32.mxu1 %v1416_v0 }
 0x126   : > { %1167 = vmatmul.mubr.msk.f32.gmra.mrb[12].mxu1 %vm551_vm2, %v501_v59 }
 0x127   : > { %682 = vmatprep.mubr.f32.mxu1 %v1416_v0 }
 0x12a   : > { %1168 = vmatmul.mubr.msk.f32.gmra.mrb[14].mxu1 %vm551_vm2, %v502_v60 }
 0x1e1   : > { %v642_v62 = vpop.f32.mrb[0].mxu1 }
 0x1e2   : > { %v643_v63 = vadd.f32 %v642_v62, %v514_v61  ;;  %v644_v1 = vpop.f32.mrb[1].mxu1 }
 0x1e3   : > { %v645_v2 = vadd.f32 %v644_v1, %v514_v61 }
 0x1e4   : > { %v721_v3 = vxor.u32 2147483647, %v643_v63  ;;  %vm705_vm3 = vcmp.ge.s32.totalorder %v643_v63, 0 }
 0x1e5   : > { %v722_v6 = vxor.u32 2147483647, %v645_v2  ;;  %v648_v7 = vpop.f32.mrb[2].mxu1  ;;  %vm706_vm4 = vcmp.ge.s32.totalorder %v645_v2, 0 }
 0x1e6   : > { %v649_v8 = vadd.f32 %v648_v7, %v519_v5  ;;  %v650_v0 = vpop.f32.mrb[3].mxu1  ;;  %v737_v10 = vsel %vm705_vm3, %v643_v63, %v721_v3  ;;  %v759_v7 = vadd.s32 40, %v1628_v11 }
 0x1e7   : > { %v651_v9 = vadd.f32 %v650_v0, %v519_v5  ;;  %v738_v14 = vsel %vm706_vm4, %v645_v2, %v722_v6  ;;  %v762_v20 = vand.u32 4294967232, %v737_v10 }
 0x1e8   : > { %vm707_vm5 = vcmp.ge.s32.totalorder %v649_v8, 0  ;;  %v723_v12 = vxor.u32 2147483647, %v649_v8  ;;  %v763_v23 = vand.u32 4294967232, %v738_v14 }
 0x1e9   : > { %v654_v15 = vpop.f32.mrb[4].mxu1  ;;  %v724_v17 = vxor.u32 2147483647, %v651_v9  ;;  %vm708_vm6 = vcmp.ge.s32.totalorder %v651_v9, 0  ;;  %v1637_v36 = vor.u32 %v762_v20, %v1628_v11 }
 0x1ea   : > { %v655_v18 = vadd.f32 %v654_v15, %v524_v13  ;;  %v656_v19 = vpop.f32.mrb[5].mxu1  ;;  %v739_v21 = vsel %vm707_vm5, %v649_v8, %v723_v12  ;;  %v1640_v40 = vor.u32 %v763_v23, %v1628_v11  ;;  %v544_v12 = vpop.permute.xlu0 %543  ;;  %v760_v23 = vadd.s32 48, %v1628_v11 }
 0x1eb   : > { %v657_v22 = vadd.f32 %v656_v19, %v524_v13  ;;  %v764_v31 = vand.u32 4294967232, %v739_v21  ;;  %v740_v32 = vsel %vm708_vm6, %v651_v9, %v724_v17 }
 0x1ec   : > { %vm709_vm7 = vcmp.ge.s32.totalorder %v655_v18, 0  ;;  %v725_v24 = vxor.u32 2147483647, %v655_v18  ;;  %v765_v44 = vand.u32 4294967232, %v740_v32  ;;  %v549_v32 = vpop.permute.xlu1 %548 }
 0x1ed   : > { %vm710_vm8 = vcmp.ge.s32.totalorder %v657_v22, 0  ;;  %v726_v27 = vxor.u32 2147483647, %v657_v22  ;;  %v660_v28 = vpop.f32.mrb[6].mxu1  ;;  %v1644_v48 = vor.u32 %v764_v31, %v755_v16 }
 0x1ee   : > { %v741_v33 = vsel %vm709_vm7, %v655_v18, %v725_v24  ;;  %v661_v34 = vadd.f32 %v660_v28, %v529_v26  ;;  %v662_v35 = vpop.f32.mrb[7].mxu1  ;;  %v1658_v63 = vor.u32 %v765_v44, %v755_v16 }
 0x1ef   : > { %v766_v37 = vand.u32 4294967232, %v741_v33  ;;  %v742_v38 = vsel %vm710_vm8, %v657_v22, %v726_v27  ;;  %v663_v39 = vadd.f32 %v662_v35, %v529_v26 }
 0x1f0   : > { %v767_v41 = vand.u32 4294967232, %v742_v38  ;;  %vm711_vm9 = vcmp.ge.s32.totalorder %v661_v34, 0  ;;  %v727_v42 = vxor.u32 2147483647, %v661_v34 }
 0x1f1   : > { %v1642_v45 = vor.u32 %v766_v37, %v756_v25  ;;  %vm712_vm10 = vcmp.ge.s32.totalorder %v663_v39, 0  ;;  %v728_v46 = vxor.u32 2147483647, %v663_v39  ;;  %v666_v47 = vpop.f32.mrb[8].mxu1 }
 0x1f2   : > { %v1646_v49 = vor.u32 %v767_v41, %v756_v25  ;;  %v743_v50 = vsel %vm711_vm9, %v661_v34, %v727_v42  ;;  %v667_v51 = vadd.f32 %v666_v47, %v534_v43  ;;  %v668_v52 = vpop.f32.mrb[9].mxu1 }
 0x1f3   : > { %vm794_vm11 = vcmp.lt.s32.totalorder %v1637_v36, %v1642_v45  ;;  %v768_v53 = vand.u32 4294967232, %v743_v50  ;;  %v744_v54 = vsel %vm712_vm10, %v663_v39, %v728_v46  ;;  %v669_v55 = vadd.f32 %v668_v52, %v534_v43 }
 0x1f4   : > { %v795_v56 = vsel %vm794_vm11, %v1637_v36, %v1642_v45  ;;  %vm817_vm12 = vcmp.lt.s32.totalorder %v1640_v40, %v1646_v49  ;;  %v769_v57 = vand.u32 4294967232, %v744_v54  ;;  %vm713_vm13 = vcmp.ge.s32.totalorder %v667_v51, 0 }
 0x1f5   : > { %v818_v59 = vsel %vm817_vm12, %v1640_v40, %v1646_v49  ;;  %v1656_v60 = vor.u32 %v768_v53, %v757_v29  ;;  %v729_v61 = vxor.u32 2147483647, %v667_v51  ;;  %vm714_vm14 = vcmp.ge.s32.totalorder %v669_v55, 0  ;;  %v672_v62 = vpop.f32.mrb[10].mxu1 }
 0x1f6   : > { %v1660_v1 = vor.u32 %v769_v57, %v757_v29  ;;  %v730_v2 = vxor.u32 2147483647, %v669_v55  ;;  %v673_v3 = vadd.f32 %v672_v62, %v539_v58  ;;  %v674_v5 = vpop.f32.mrb[11].mxu1  ;;  %v761_v53 = vadd.s32 56, %v1628_v11 }
 0x1f7   : > { %vm796_vm15 = vcmp.lt.s32.totalorder %v1644_v48, %v1656_v60  ;;  %v745_v6 = vsel %vm713_vm13, %v667_v51, %v729_v61  ;;  %v675_v8 = vadd.f32 %v674_v5, %v539_v58 }
 0x1f8   : > { %v797_v0 = vsel %vm796_vm15, %v1644_v48, %v1656_v60  ;;  %vm819_vm0 = vcmp.lt.s32.totalorder %v1658_v63, %v1660_v1  ;;  %v770_v9 = vand.u32 4294967232, %v745_v6  ;;  %v746_v10 = vsel %vm714_vm14, %v669_v55, %v730_v2 }
 0x1f9   : > { %v820_v13 = vsel %vm819_vm0, %v1658_v63, %v1660_v1  ;;  %v771_v14 = vand.u32 4294967232, %v746_v10  ;;  %vm715_vm1 = vcmp.ge.s32.totalorder %v673_v3, 0  ;;  %v731_v15 = vxor.u32 2147483647, %v673_v3  ;;  %v678_v16 = vpop.f32.mrb[12].mxu1 }
 0x1fa   : > { %v1672_v17 = vor.u32 %v770_v9, %v1634_v30  ;;  %vm716_vm2 = vcmp.ge.s32.totalorder %v675_v8, 0  ;;  %v732_v18 = vxor.u32 2147483647, %v675_v8  ;;  %v679_v19 = vadd.f32 %v678_v16, %v544_v12  ;;  %v680_v20 = vpop.f32.mrb[13].mxu1 }
 0x1fb   : > { %v1675_v21 = vor.u32 %v771_v14, %v1634_v30  ;;  %v747_v22 = vsel %vm715_vm1, %v673_v3, %v731_v15  ;;  %v681_v24 = vadd.f32 %v680_v20, %v544_v12  ;;  %v1418_v15 = vmov 1966171168  }
 0x1fc   : > { %vm798_vm3 = vcmp.lt.s32.totalorder %v795_v56, %v1672_v17  ;;  %v772_v25 = vand.u32 4294967232, %v747_v22  ;;  %v748_v26 = vsel %vm716_vm2, %v675_v8, %v732_v18  ;;  %vm717_vm4 = vcmp.ge.s32.totalorder %v679_v19, 0 }
 0x1fd   : > { %v799_v27 = vsel %vm798_vm3, %v795_v56, %v1672_v17  ;;  %vm821_vm5 = vcmp.lt.s32.totalorder %v818_v59, %v1675_v21  ;;  %v773_v28 = vand.u32 4294967232, %v748_v26  ;;  %v733_v29 = vxor.u32 2147483647, %v679_v19  ;;  %v684_v31 = vpop.f32.mrb[14].mxu1 }
 0x1fe   : > { %v822_v30 = vsel %vm821_vm5, %v818_v59, %v1675_v21  ;;  %v1682_v33 = vor.u32 %v772_v25, %v759_v7  ;;  %vm718_vm6 = vcmp.ge.s32.totalorder %v681_v24, 0  ;;  %v734_v34 = vxor.u32 2147483647, %v681_v24  ;;  %v686_v35 = vpop.f32.mrb[15].mxu1 }
 0x1ff   : > { %v1684_v37 = vor.u32 %v773_v28, %v759_v7  ;;  %v749_v38 = vsel %vm717_vm4, %v679_v19, %v733_v29  ;;  %v685_v39 = vadd.f32 %v684_v31, %v549_v32  ;;  %v687_v41 = vadd.f32 %v686_v35, %v549_v32 }
 0x200   : > { %vm800_vm7 = vcmp.lt.s32.totalorder %v797_v0, %v1682_v33  ;;  %v774_v42 = vand.u32 4294967232, %v749_v38  ;;  %v750_v43 = vsel %vm718_vm6, %v681_v24, %v734_v34  ;;  %v979_v16 = vunpack.c.l.s4 %v1418_v15 }
 0x201   : > { %v801_v44 = vsel %vm800_vm7, %v797_v0, %v1682_v33  ;;  %vm823_vm8 = vcmp.lt.s32.totalorder %v820_v13, %v1684_v37  ;;  %v775_v46 = vand.u32 4294967232, %v750_v43  ;;  %vm719_vm9 = vcmp.ge.s32.totalorder %v685_v39, 0 }
 0x202   : > { %v824_v47 = vsel %vm823_vm8, %v820_v13, %v1684_v37  ;;  %v1690_v50 = vor.u32 %v774_v42, %v760_v23  ;;  %v735_v51 = vxor.u32 2147483647, %v685_v39  ;;  %vm720_vm10 = vcmp.ge.s32.totalorder %v687_v41, 0 }
 0x203   : > { %v1692_v52 = vor.u32 %v775_v46, %v760_v23  ;;  %v736_v54 = vxor.u32 2147483647, %v687_v41  ;;  %v980_v23 = vunpack.c.0.s8 %v979_v16 }
 0x204   : > { %vm802_vm11 = vcmp.lt.s32.totalorder %v799_v27, %v1690_v50  ;;  %v751_v55 = vsel %vm719_vm9, %v685_v39, %v735_v51 }
 0x205   : > { %v803_v56 = vsel %vm802_vm11, %v799_v27, %v1690_v50  ;;  %vm825_vm12 = vcmp.lt.s32.totalorder %v822_v30, %v1692_v52  ;;  %v776_v57 = vand.u32 4294967232, %v751_v55  ;;  %v752_v58 = vsel %vm720_vm10, %v687_v41, %v736_v54 }
 0x206   : > { %v826_v59 = vsel %vm825_vm12, %v822_v30, %v1692_v52  ;;  %v777_v61 = vand.u32 4294967232, %v752_v58 }
 0x207   : > { %v1699_v62 = vor.u32 %v776_v57, %v761_v53 }
 0x208   : > { %v793_v2 = vor.u32 %v777_v61, %v761_v53 }
 0x209   : > { %vm804_vm13 = vcmp.lt.s32.totalorder %v801_v44, %v1699_v62 }
 0x20a   : > { %v805_v3 = vsel %vm804_vm13, %v801_v44, %v1699_v62  ;;  %vm827_vm14 = vcmp.lt.s32.totalorder %v824_v47, %v793_v2 }
 0x20b   : > { %vm806_vm15 = vcmp.lt.s32.totalorder %v803_v56, %v805_v3  ;;  %v828_v5 = vsel %vm827_vm14, %v824_v47, %v793_v2 }
 0x20c   : > { %v807_v6 = vsel %vm806_vm15, %v803_v56, %v805_v3  ;;  %vm829_vm0 = vcmp.lt.s32.totalorder %v826_v59, %v828_v5 }
 0x20d   : > { %v808_v7 = vrot.slane %v807_v6, 4  ;;  %v830_v8 = vsel %vm829_vm0, %v826_v59, %v828_v5 }
 0x20e   : > { %v831_v0 = vrot.slane %v830_v8, 4 }
 0x20f   : > { %vm809_vm1 = vcmp.lt.s32.totalorder %v807_v6, %v808_v7 }
 0x210   : > { %v810_v9 = vsel %vm809_vm1, %v807_v6, %v808_v7  ;;  %vm832_vm2 = vcmp.lt.s32.totalorder %v830_v8, %v831_v0 }
 0x211   : > { %v811_v10 = vrot.slane %v810_v9, 2  ;;  %v833_v12 = vsel %vm832_vm2, %v830_v8, %v831_v0 }
 0x212   : > { %v834_v13 = vrot.slane %v833_v12, 2 }
 0x213   : > { %vm812_vm3 = vcmp.lt.s32.totalorder %v810_v9, %v811_v10 }
 0x214   : > { %v813_v14 = vsel %vm812_vm3, %v810_v9, %v811_v10  ;;  %vm835_vm4 = vcmp.lt.s32.totalorder %v833_v12, %v834_v13 }
 0x215   : > { %v814_v18 = vrot.slane %v813_v14, 1  ;;  %v836_v19 = vsel %vm835_vm4, %v833_v12, %v834_v13 }
 0x216   : > { %v837_v20 = vrot.slane %v836_v19, 1 }
 0x217   : > { %vm815_vm5 = vcmp.lt.s32.totalorder %v813_v14, %v814_v18 }
 0x218   : > { %v816_v22 = vsel %vm815_vm5, %v813_v14, %v814_v18  ;;  %vm838_vm6 = vcmp.lt.s32.totalorder %v836_v19, %v837_v20 }
 0x219   : > { %v839_v24 = vsel %vm838_vm6, %v836_v19, %v837_v20  ;;  %vm842_vm7 = vcmp.eq.s32.totalorder %v1637_v36, %v816_v22  ;;  %vm844_vm8 = vcmp.eq.s32.totalorder %v1644_v48, %v816_v22  ;;  %vm846_vm9 = vcmp.eq.s32.totalorder %v1642_v45, %v816_v22 }
 0x21a   : > { %vm843_vm10 = vcmp.eq.s32.totalorder %v1640_v40, %v839_v24  ;;  %vm845_vm11 = vcmp.eq.s32.totalorder %v1658_v63, %v839_v24  ;;  %vm1708_vm12 = vmpackc.low %vm844_vm8, %vm842_vm7  ;;  %vm847_vm13 = vcmp.eq.s32.totalorder %v1646_v49, %v839_v24  ;;  %vm849_vm14 = vcmp.eq.s32.totalorder %v1660_v1, %v839_v24  ;;  %v890_v63 = vld [vmem:[%s1827_s5] sm:$0xf] }
 0x21b   : > { %vm1221_vm15 = vmpackc.low %vm845_vm11, %vm843_vm10  ;;  %vm848_vm0 = vcmp.eq.s32.totalorder %v1656_v60, %v816_v22  ;;  %vm851_vm1 = vcmp.eq.s32.totalorder %v1675_v21, %v839_v24  ;;  %vm853_vm2 = vcmp.eq.s32.totalorder %v1684_v37, %v839_v24  ;;  %vm850_vm3 = vcmp.eq.s32.totalorder %v1672_v17, %v816_v22 }
 0x21c   : > { %v1419_v36 = vmov 1.0|1.0   ;;  %vm1225_vm4 = vmpackc.low %vm849_vm14, %vm847_vm13  ;;  %vm852_vm5 = vcmp.eq.s32.totalorder %v1682_v33, %v816_v22  ;;  %vm855_vm6 = vcmp.eq.s32.totalorder %v1692_v52, %v839_v24  ;;  %vm857_vm7 = vcmp.eq.s32.totalorder %v793_v2, %v839_v24 }
 0x21d   : > { %1222 = vmatprep.subr.msk.bf16.mxu0 %vm1221_vm15, %v1419_v36  ;;  %vm854_vm8 = vcmp.eq.s32.totalorder %v1690_v50, %v816_v22  ;;  %vm1227_vm10 = vmpackc.low %vm848_vm0, %vm846_vm9  ;;  %vm856_vm11 = vcmp.eq.s32.totalorder %v1699_v62, %v816_v22  ;;  %v840_v40 = vand.u32 63, %v816_v22  ;;  %v841_v48 = vand.u32 63, %v839_v24 }
 0x21e   : > { %1224 = vmatpush1.bf16.msk.msra.mxu0 %vm1708_vm12, %v1419_v36  ;;  %v983_v49 = vsub.s32 %v980_v23, %v1628_v11  ;;  %vm1229_vm13 = vmpackc.low %vm853_vm2, %vm851_vm1  ;;  %vm994_vm15 = vcmp.lt.s32.totalorder %v753_v4, 256  ;;  %vm897_vm0 = vcmask 523264  }
 0x21f   : > { %1226 = vmatprep.subr.msk.bf16.mxu0 %vm1225_vm4, %v1419_v36  ;;  %vm1231_vm14 = vmpackc.low %vm852_vm5, %vm850_vm3  ;;  %v977_v60 = vcombine.low %v840_v40, %v841_v48 }
 0x220   : > { %vm1233_vm9 = vmpackc.low %vm857_vm7, %vm855_vm6 }
 0x221   : > { %vm1235_vm12 = vmpackc.low %vm856_vm11, %vm854_vm8  ;;  %v984_v11 = vrot.slane %v977_v60, %v983_v49 }
 0x222   : > { %1228 = vmatpush1.bf16.msk.msra.mxu0 %vm1227_vm10, %v1419_v36 }
 0x223   : > { %1230 = vmatprep.subr.msk.bf16.mxu0 %vm1229_vm13, %v1419_v36  ;;  %v991_v45 = vrot.slane %v984_v11, %v983_v49 }
 0x225   : > { %996 = vst.msk [vmem:[%s336_s12] sm:$0x3] %vm994_vm15, %v991_v45 }
 0x226   : > { %1232 = vmatpush1.bf16.msk.msra.mxu0 %vm1231_vm14, %v1419_v36 }
 0x227   : > { %1234 = vmatprep.subr.msk.bf16.mxu0 %vm1233_vm9, %v1419_v36 }
 0x22a   : > { %1236 = vmatpush1.bf16.msk.msra.mxu0 %vm1235_vm12, %v1419_v36 }
 0x22d   : > { %1201 = vmatmul.mubr.msk.f32.vlgmr.msra.gmra.mrb[8].mxu0 %vm897_vm0, %v890_v63 }
 0x22e   : > { %1317 = shalt.err (!%p1314_p5)
}
 0x22f   : > { %s1318_s12 = scalar_lea.hbm %s1749_s23, 32  ;;  %s1322_s22 = scalar_lea.hbm %s1830_s8, 64 }
 0x230   : > { %p1319_p6 = scmp.ne.s32.totalorder %s1749_s23, %s1318_s12  ;;  %p1323_p10 = scmp.lt.u32.totalorder %s1749_s23, %s1830_s8 }
 0x231   : > { %p1324_p11 = scmp.lt.u32.totalorder %s1322_s22, %s1318_s12  ;;  %p1326_p13 = scmp.lt.u32.totalorder %s1318_s12, %s1749_s23 }
 0x232   : > { %p1320_p7 = pnand %p1319_p6, %p1507_p4 }
 0x233   : > { %p1325_p12 = por %p1324_p11, %p1323_p10 }
 0x234   : > { %p1321_p9 = pneg %p1320_p7 }
 0x235   : > { %p1327_p0 = por %p1326_p13, %p1325_p12 }
 0x237   : > { %p1328_p1 = pnand %p1327_p0, %p1321_p9 }
 0x239   : > { %1331 = shalt.err (!%p1328_p1)
}
 0x23a   : > { %1238 = dma.vmem_to_hbm [thread:$0]  (%p1507_p4), %s1036_s20, 32, %s1749_s23, %s1003_s25   ;;  %v895_v4 = vpop.permute.xlu0 %894 }
 0x23b   : > { %s1151_s26 = sshll.u32 %s1722_s24, 3  ;;  %s1211_s11 = sshll.u32 %s1406_s30, 7 }
 0x23c   : > { %s329_s14 = scalar_lea.vmem [#allocation2], %s1151_s26  ;;  %s1774_s22 = scalar_lea.hbm %s1829_s7, %s1211_s11 }
 0x23d   : > { %s1019_s16 = sshll.u32 %s329_s14, 4  ;;  %s998_s20 = scalar_lea.sflag [#allocation3], %s1722_s24  ;;  %s1776_s16 = int_to_ptr.vmem [resolvable:$true] %s1019_s16 }
 0x23e   : > { %s1332_s23 = scalar_lea.vmem %s1776_s16, 128  ;;  %s1421_s30 = smov [#allocation2]  }
 0x23f   : > { %p1333_p2 = scmp.ne.s32.totalorder %s1776_s16, %s1332_s23  ;;  %s1336_s25 = sshll.u32 %s1421_s30, 4  ;;  %s1337_s25 = int_to_ptr.vmem [resolvable:$false] %s1336_s25 }
 0x240   : > { %s1338_s21 = scalar_lea.vmem %s1337_s25, 256  ;;  %p1339_p6 = scmp.lt.s32.totalorder %s1776_s16, %s1337_s25 }
 0x241   : > { %p1334_p3 = pnand %p1333_p2, %p1507_p4  ;;  %p1340_p7 = scmp.lt.s32.totalorder %s1338_s21, %s1332_s23 }
 0x243   : > { %p1335_p5 = pneg %p1334_p3  ;;  %p1341_p9 = por %p1340_p7, %p1339_p6 }
 0x245   : > { %p1342_p10 = pnand %p1341_p9, %p1335_p5 }
 0x300   : > { %v967_v1 = vpop.f32.mrb[8].mxu0 }
 0x301   : > { %v968_v17 = vadd.f32 %v967_v1, %v895_v4  ;;  %v969_v21 = vpop.f32.mrb[9].mxu0 }
 0x302   : > { %v970_v26 = vadd.f32 %v969_v21, %v895_v4 }
 0x304   : > { %v974_v27 = vcombine.low %v968_v17, %v970_v26 }
 0x306   : > { %976 = vst [vmem:[%s329_s14] sm:$0xff] %v974_v27 }
 0x307   : > { %1345 = shalt.err (!%p1342_p10)
}
 0x308   : > { %s1346_s24 = scalar_lea.hbm %s1774_s22, 128  ;;  %s1350_s11 = scalar_lea.hbm %s1829_s7, 256 }
 0x309   : > { %p1347_p11 = scmp.ne.s32.totalorder %s1774_s22, %s1346_s24  ;;  %p1351_p0 = scmp.lt.u32.totalorder %s1774_s22, %s1829_s7 }
 0x30a   : > { %p1352_p1 = scmp.lt.u32.totalorder %s1350_s11, %s1346_s24  ;;  %p1354_p3 = scmp.lt.u32.totalorder %s1346_s24, %s1774_s22 }
 0x30b   : > { %p1348_p12 = pnand %p1347_p11, %p1507_p4 }
 0x30c   : > { %p1353_p2 = por %p1352_p1, %p1351_p0 }
 0x30d   : > { %p1349_p13 = pneg %p1348_p12 }
 0x30e   : > { %p1355_p5 = por %p1354_p3, %p1353_p2 }
 0x310   : > { %p1356_p6 = pnand %p1355_p5, %p1349_p13 }
 0x312   : > { %1359 = shalt.err (!%p1356_p6)
}
 0x313   : > { %1237 = dma.vmem_to_hbm [thread:$0]  (%p1507_p4), %s1776_s16, 128, %s1774_s22, %s998_s20  }
 0x314 PF: > { %p1248_p7 = scmp.ge.s32.totalorder %s1414_s10, 2  ;;  %s1047_s19 = sand.u32 1, %s1394_s27  }
 0x315   : > { %s1048_s23 = scalar_lea.sflag [#allocation3], %s1047_s19 }
 0x316   : > { %p1242_p9 = pnand %p1248_p7, %p1514_p8 }
 0x318   : > { %1385 = dma.done.wait (!%p1242_p9), %s1048_s23, 128  }
 0x319   : > { %1387 = vsyncadd (!%p1242_p9), %s1048_s23, 4294967168  ;;  %s1057_s30 = scalar_lea.sflag [#allocation5], %s1047_s19 }
 0x31a   : > { %1389 = dma.done.wait (!%p1242_p9), %s1057_s30, 32  }
 0x31b   : > { %1391 = vsyncadd (!%p1242_p9), %s1057_s30, 4294967264  ;;  %s25_s10 = sadd.s32 1, %s1414_s10   ;;  %s1837_s27 = smov %s1398_s28 }
 0x31c   : > { %p22_p10 = scmp.ge.s32.totalorder %s25_s10, 4   ;;  %s1838_s28 = smov %s1402_s29 }
 0x31d   : > { %s1839_s29 = smov %s1520_s18  ;;  %s1840_s30 = smov %s1410_s9 }
 0x31e   : > { %s1841_s9 = smov %s1843_s13  ;;  %24 = sbr.rel (!%p22_p10) target bundleno = 8 (0x8), region = 100 }
 0x325   :  { %1062 = vsyncpa [#allocation3], 1 }
 0x326   :  { %1064 = vsyncpa [#allocation3 + $0x1], 1 }
 0x327   :  { %1065 = vsyncpa [#allocation5], 1 }
 0x328   :  { %1067 = vsyncpa [#allocation5 + $0x1], 1 }

</bundles_post_ra>
